<compile_context>
chip_gen: v6e
topology: v6e:2x2x1
jax: 0.10.0
libtpu: 0.0.40
codegen_flags: <defaults>
</compile_context>

<pallas_src>
import jax
import jax.numpy as jnp
from jax.experimental import pallas as pl
from jax.experimental.pallas import tpu as pltpu


def mlp_kernel(p_ref, x_ref, out_ref):
    """Fused Linear(3,2) -> ReLU -> Linear(2,1), batch on the lane axis.

    p_ref  : SMEM (11,) f32 = [w1[0,0], w1[0,1], w1[1,0], w1[1,1], w1[2,0],
                               w1[2,1], b1[0],  b1[1],  w2[0],  w2[1],  b2]
             (w1 stored [in, out], row-major)
    x_ref  : VMEM (3, TILE_B)  -- one input feature per sublane row
    out_ref: VMEM (1, TILE_B)  -- lane-dense output slab
    """
    x = x_ref[...]                      # (3, TILE_B), already f32
    x0 = x[0:1, :]
    x1 = x[1:2, :]
    x2 = x[2:3, :]

    # Hidden layer on the VPU: h_j = x0*w1[0,j] + x1*w1[1,j] + x2*w1[2,j] + b1[j]
    h0 = x0 * p_ref[0] + x1 * p_ref[2] + x2 * p_ref[4] + p_ref[6]
    h1 = x0 * p_ref[1] + x1 * p_ref[3] + x2 * p_ref[5] + p_ref[7]
    a0 = jnp.maximum(h0, 0.0)           # ReLU
    a1 = jnp.maximum(h1, 0.0)

    # Output layer: y = a0*w2[0] + a1*w2[1] + b2
    out_ref[...] = a0 * p_ref[8] + a1 * p_ref[9] + p_ref[10]


def mlp_forward(x, w1, b1, w2, b2, *, tile_b=4096):
    """x: (B, 3) f32; w1: (3, 2); b1: (2,); w2: (2, 1); b2: (1,).  Returns (B, 1)."""
    B = x.shape[0]

    # Pack the 11 scalars into one SMEM vector (no per-step VMEM weight DMAs).
    params = jnp.concatenate(
        [w1.reshape(-1), b1.reshape(-1), w2.reshape(-1), b2.reshape(-1)]
    ).astype(jnp.float32)

    # Lane-dense layout: put the batch on the lane (last) axis.
    xt = x.astype(jnp.float32).T                      # (3, B)
    tile_b = min(tile_b, pl.cdiv(B, 128) * 128)       # multiple of 128, <= padded batch
    Bp = pl.cdiv(B, tile_b) * tile_b
    if Bp != B:
        xt = jnp.pad(xt, ((0, 0), (0, Bp - B)))       # pad batch to tile multiple

    out = pl.pallas_call(
        mlp_kernel,
        out_shape=jax.ShapeDtypeStruct((1, Bp), jnp.float32),
        grid=(Bp // tile_b,),
        in_specs=[
            pl.BlockSpec(memory_space=pltpu.SMEM),            # packed scalars
            pl.BlockSpec((3, tile_b), lambda i: (0, i)),      # x tile, batch on lanes
        ],
        out_specs=pl.BlockSpec((1, tile_b), lambda i: (0, i)),  # lane-dense output
        compiler_params=pltpu.CompilerParams(
            dimension_semantics=("parallel",),                # shard batch across TCs (v7x)
        ),
    )(params, xt)

    return out[0, :B].reshape(B, 1)


def init_params(key):
    """Deterministic init mimicking nn.Linear's U(-1/sqrt(fan_in), 1/sqrt(fan_in))."""
    k1, k2, k3, k4 = jax.random.split(key, 4)
    bound1 = 1.0 / jnp.sqrt(3.0)
    bound2 = 1.0 / jnp.sqrt(2.0)
    # Stored as [in_features, out_features] (transposed vs. PyTorch's [out, in]).
    w1 = jax.random.uniform(k1, (3, 2), jnp.float32, -bound1, bound1)
    b1 = jax.random.uniform(k2, (2,), jnp.float32, -bound1, bound1)
    w2 = jax.random.uniform(k3, (2, 1), jnp.float32, -bound2, bound2)
    b2 = jax.random.uniform(k4, (1,), jnp.float32, -bound2, bound2)
    return w1, b1, w2, b2


if __name__ == "__main__":
    key = jax.random.PRNGKey(0)
    kp, kx = jax.random.split(key)
    w1, b1, w2, b2 = init_params(kp)

    # Small demo batch of rows with 3 features each (the PyTorch script feeds a
    # single length-3 vector; we use a batch of such rows).
    B = 256
    x = jax.random.normal(kx, (B, 3), dtype=jnp.float32)

    out = mlp_forward(x, w1, b1, w2, b2)
    out = jax.block_until_ready(out)

    # Reference check in plain JAX.
    ref = jnp.maximum(x @ w1 + b1, 0.0) @ w2 + b2
    assert out.shape == (B, 1)
    assert jnp.allclose(out, ref, atol=1e-5, rtol=1e-5), (out, ref)

    print("KERNEL_OK")
</pallas_src>

<mosaic_0001>
module attributes {stable_mosaic.version = 11 : i64} {
  func.func @mlp_kernel(%arg0: i32, %arg1: memref<11xf32, #tpu.memory_space<smem>>, %arg2: memref<3x256xf32, #tpu.memory_space<vmem>>, %arg3: memref<1x256xf32, #tpu.memory_space<vmem>>) attributes {dimension_semantics = [#tpu.dimension_semantics<parallel>], iteration_bounds = array<i64: 1>, scalar_prefetch = 0 : i64, scratch_operands = 0 : i64, tpu.core_type = #tpu.core_type<tc>, window_params = [{transform_indices = @transform_0, window_bounds = array<i64: 11>}, {transform_indices = @transform_1, window_bounds = array<i64: 3, 256>}, {transform_indices = @transform_2, window_bounds = array<i64: 1, 256>}]} {
    %c0 = arith.constant 0 : index
    %c0_0 = arith.constant 0 : index
    %0 = vector.load %arg2[%c0, %c0_0] : memref<3x256xf32, #tpu.memory_space<vmem>>, vector<3x256xf32>
    %1 = vector.extract_strided_slice %0 {offsets = [0, 0], sizes = [1, 256], strides = [1, 1]} : vector<3x256xf32> to vector<1x256xf32>
    %2 = vector.extract_strided_slice %0 {offsets = [1, 0], sizes = [1, 256], strides = [1, 1]} : vector<3x256xf32> to vector<1x256xf32>
    %3 = vector.extract_strided_slice %0 {offsets = [2, 0], sizes = [1, 256], strides = [1, 1]} : vector<3x256xf32> to vector<1x256xf32>
    %c0_1 = arith.constant 0 : index
    %4 = memref.load %arg1[%c0_1] : memref<11xf32, #tpu.memory_space<smem>>
    %5 = vector.broadcast %4 : f32 to vector<1x256xf32>
    %6 = arith.mulf %1, %5 : vector<1x256xf32>
    %c2 = arith.constant 2 : index
    %7 = memref.load %arg1[%c2] : memref<11xf32, #tpu.memory_space<smem>>
    %8 = vector.broadcast %7 : f32 to vector<1x256xf32>
    %9 = arith.mulf %2, %8 : vector<1x256xf32>
    %10 = arith.addf %6, %9 : vector<1x256xf32>
    %c4 = arith.constant 4 : index
    %11 = memref.load %arg1[%c4] : memref<11xf32, #tpu.memory_space<smem>>
    %12 = vector.broadcast %11 : f32 to vector<1x256xf32>
    %13 = arith.mulf %3, %12 : vector<1x256xf32>
    %14 = arith.addf %10, %13 : vector<1x256xf32>
    %c6 = arith.constant 6 : index
    %15 = memref.load %arg1[%c6] : memref<11xf32, #tpu.memory_space<smem>>
    %16 = vector.broadcast %15 : f32 to vector<1x256xf32>
    %17 = arith.addf %14, %16 : vector<1x256xf32>
    %c1 = arith.constant 1 : index
    %18 = memref.load %arg1[%c1] : memref<11xf32, #tpu.memory_space<smem>>
    %19 = vector.broadcast %18 : f32 to vector<1x256xf32>
    %20 = arith.mulf %1, %19 : vector<1x256xf32>
    %c3 = arith.constant 3 : index
    %21 = memref.load %arg1[%c3] : memref<11xf32, #tpu.memory_space<smem>>
    %22 = vector.broadcast %21 : f32 to vector<1x256xf32>
    %23 = arith.mulf %2, %22 : vector<1x256xf32>
    %24 = arith.addf %20, %23 : vector<1x256xf32>
    %c5 = arith.constant 5 : index
    %25 = memref.load %arg1[%c5] : memref<11xf32, #tpu.memory_space<smem>>
    %26 = vector.broadcast %25 : f32 to vector<1x256xf32>
    %27 = arith.mulf %3, %26 : vector<1x256xf32>
    %28 = arith.addf %24, %27 : vector<1x256xf32>
    %c7 = arith.constant 7 : index
    %29 = memref.load %arg1[%c7] : memref<11xf32, #tpu.memory_space<smem>>
    %30 = vector.broadcast %29 : f32 to vector<1x256xf32>
    %31 = arith.addf %28, %30 : vector<1x256xf32>
    %cst = arith.constant 0.000000e+00 : f32
    %32 = vector.broadcast %cst : f32 to vector<1x256xf32>
    %33 = arith.maximumf %17, %32 : vector<1x256xf32>
    %cst_2 = arith.constant 0.000000e+00 : f32
    %34 = vector.broadcast %cst_2 : f32 to vector<1x256xf32>
    %35 = arith.maximumf %31, %34 : vector<1x256xf32>
    %c8 = arith.constant 8 : index
    %36 = memref.load %arg1[%c8] : memref<11xf32, #tpu.memory_space<smem>>
    %37 = vector.broadcast %36 : f32 to vector<1x256xf32>
    %38 = arith.mulf %33, %37 : vector<1x256xf32>
    %c9 = arith.constant 9 : index
    %39 = memref.load %arg1[%c9] : memref<11xf32, #tpu.memory_space<smem>>
    %40 = vector.broadcast %39 : f32 to vector<1x256xf32>
    %41 = arith.mulf %35, %40 : vector<1x256xf32>
    %42 = arith.addf %38, %41 : vector<1x256xf32>
    %c10 = arith.constant 10 : index
    %43 = memref.load %arg1[%c10] : memref<11xf32, #tpu.memory_space<smem>>
    %44 = vector.broadcast %43 : f32 to vector<1x256xf32>
    %45 = arith.addf %42, %44 : vector<1x256xf32>
    %c0_3 = arith.constant 0 : index
    %c0_4 = arith.constant 0 : index
    %46 = vector.load %arg3[%c0_3, %c0_4] : memref<1x256xf32, #tpu.memory_space<vmem>>, vector<1x256xf32>
    tpu.vector_store %arg3[%c0_3, %c0_4], %45 {strides = array<i32>} : memref<1x256xf32, #tpu.memory_space<vmem>>, vector<1x256xf32>,
    return
  }
  func.func @transform_0(%arg0: i32) -> i32 {
    %c0_i32 = arith.constant 0 : i32
    %c0_i32_0 = arith.constant 0 : i32
    return %c0_i32 : i32
  }
  func.func @transform_1(%arg0: i32) -> (i32, i32) {
    %c0_i32 = arith.constant 0 : i32
    %c0_i32_0 = arith.constant 0 : i32
    return %c0_i32, %arg0 : i32, i32
  }
  func.func @transform_2(%arg0: i32) -> (i32, i32) {
    %c0_i32 = arith.constant 0 : i32
    %c0_i32_0 = arith.constant 0 : i32
    return %c0_i32, %arg0 : i32, i32
  }
}

</mosaic_0001>

<bundles_post_ra>
// kernel: tpu_custom_call.1
= control target key start
LH: loop header
LB: loop body
LE: loop exit
PB: predicated region body
PF: predicated region fallthrough
CT: control target
= control target key end

     0   :  { %7 = vsyncpa [#allocation5], 0  ;;  %s229_s0 = inlined_call_operand.hbm [shape: f32[11], index: 0, kind: input, shape index: {}]   ;;  %s230_s1 = inlined_call_operand.hbm [shape: f32[3,256], index: 1, kind: input, shape index: {}]   ;;  %s231_s2 = inlined_call_operand.hbm [shape: f32[1,256], index: 2, kind: output, shape index: {}]  }
   0x1   :  { %8 = vsyncpa [#allocation3], 0 }
   0x2   :  { %9 = vsyncpa [#allocation4], 0  ;;  %s201_s9 = smov [#allocation2]   ;;  %s202_s12 = smov [#allocation6]  }
   0x3   :  { %17 = dma.hbm_to_smem %s229_s0, 16, %s201_s9, [#allocation5]  }
   0x4   :  { %s24_s13 = sshll.u32 %s202_s12, 4  ;;  %s25_s13 = int_to_ptr.vmem [resolvable:$true] %s24_s13 }
   0x5   :  { %s163_s14 = scalar_lea.vmem %s25_s13, 128  ;;  %p168_p1 = scmp.lt.s32.totalorder %s25_s13, %s25_s13 }
   0x6   :  { %p164_p0 = scmp.ne.s32.totalorder %s25_s13, %s163_s14  ;;  %p169_p2 = scmp.lt.s32.totalorder %s163_s14, %s163_s14 }
   0x8   :  { %p170_p3 = por %p169_p2, %p168_p1 }
   0xa   :  { %p171_p4 = pnand %p170_p3, %p164_p0 }
   0xc   :  { %174 = shalt.err (!%p171_p4)
}
   0xd   :  { %27 = dma.hbm_to_vmem [thread:$0]  %s230_s1, 128, %s25_s13, [#allocation3]  }
   0xe   :  { %195 = dma.done.wait [#allocation5], 16  }
   0xf   :  { %196 = vsyncadd [#allocation5], 4294967280 }
  0x10   :  { %197 = dma.done.wait [#allocation3], 128  }
  0x11   :  { %198 = vsyncadd [#allocation3], 4294967168 }
  0x12   :  { %34 = sfence }
  0x13   :  { %s36_s0 = sld [smem:[#allocation2]]  ;;  %v35_v0 = vld [vmem:[#allocation6] sm:$0x77]  ;;  %v203_v25 = vmov 1966171168   ;;  %v96_v27 = vlaneseq  ;;  %s204_s26 = smov [#allocation7]  }
  0x14   :  { %s129_s17 = sld [smem:[#allocation2 + $0x2]]  ;;  %v94_v26 = vunpack.c.l.s4 %v203_v25  ;;  %s119_s27 = sshll.u32 %s204_s26, 4  ;;  %s120_s27 = int_to_ptr.vmem [resolvable:$true] %s119_s27 }
  0x15   :  { %s131_s18 = sld [smem:[#allocation2 + $0x4]]  ;;  %v97_v34 = vshrl.u32 %v96_v27, 7  ;;  %vm110_vm0 = vcmp.lt.s32.totalorder %v96_v27, 256  ;;  %s175_s28 = scalar_lea.vmem %s120_s27, 32 }
  0x16   :  { %s133_s19 = sld [smem:[#allocation2 + $0x6]]  ;;  %v95_v33 = vunpack.c.0.s8 %v94_v26  ;;  %p176_p5 = scmp.ne.s32.totalorder %s120_s27, %s175_s28 }
  0x17   :  { %s134_s20 = sld [smem:[#allocation2 + $0x1]]  ;;  %p180_p6 = scmp.lt.s32.totalorder %s120_s27, %s120_s27 }
  0x18   :  { %s135_s21 = sld [smem:[#allocation2 + $0x3]]  ;;  %v98_v38 = vsub.s32 %v95_v33, %v97_v34  ;;  %p181_p7 = scmp.lt.s32.totalorder %s175_s28, %s175_s28 }
  0x19   :  { %v37_v1 = vstv %s36_s0  ;;  %s137_s22 = sld [smem:[#allocation2 + $0x5]] }
  0x1a   :  { %v40_v2 = vstv %s129_s17  ;;  %v38_v3 = vmul.f32 %v37_v1, %v35_v0  ;;  %s139_s1 = sld [smem:[#allocation2 + $0x7]]  ;;  %p182_p8 = por %p181_p7, %p180_p6 }
  0x1b   :  { %v41_v4 = vmul.f32 %v40_v2, %v35_v0  ;;  %v48_v5 = vstv %s131_s18  ;;  %s140_s23 = sld [smem:[#allocation2 + $0x8]] }
  0x1c   :  { %v49_v6 = vmul.f32 %v48_v5, %v35_v0  ;;  %v56_v15 = vstv %s133_s19  ;;  %s141_s24 = sld [smem:[#allocation2 + $0x9]]  ;;  %p183_p9 = pnand %p182_p8, %p176_p5 }
  0x1d   :  { %v130_v7 = vrot.slane %v41_v4, 9  ;;  %v59_v8 = vstv %s134_s20  ;;  %s142_s25 = sld [smem:[#allocation2 + $0xa]] }
  0x1e   :  { %v132_v9 = vrot.slane %v49_v6, 10  ;;  %v62_v10 = vstv %s135_s21  ;;  %v60_v12 = vmul.f32 %v59_v8, %v35_v0 }
  0x1f   :  { %v46_v11 = vadd.f32 %v130_v7, %v38_v3  ;;  %v63_v13 = vmul.f32 %v62_v10, %v35_v0  ;;  %v70_v14 = vstv %s137_s22 }
  0x20   :  { %v71_v16 = vmul.f32 %v70_v14, %v35_v0  ;;  %v78_v22 = vstv %s139_s1 }
  0x21   :  { %v54_v17 = vadd.f32 %v132_v9, %v46_v11  ;;  %v136_v18 = vrot.slane %v63_v13, 9  ;;  %v83_v28 = vstv %s140_s23 }
  0x22   :  { %v138_v19 = vrot.slane %v71_v16, 10  ;;  %v86_v30 = vstv %s141_s24 }
  0x23   :  { %v57_v20 = vadd.f32 %v56_v15, %v54_v17  ;;  %v68_v21 = vadd.f32 %v136_v18, %v60_v12  ;;  %v90_v36 = vstv %s142_s25 }
  0x25   :  { %v76_v23 = vadd.f32 %v138_v19, %v68_v21  ;;  %v80_v24 = vmax.f32 %v57_v20, 0.0 }
  0x27   :  { %v79_v29 = vadd.f32 %v78_v22, %v76_v23  ;;  %v84_v32 = vmul.f32 %v83_v28, %v80_v24 }
  0x29   :  { %v81_v31 = vmax.f32 %v79_v29, 0.0 }
  0x2b   :  { %v87_v35 = vmul.f32 %v86_v30, %v81_v31 }
  0x2d   :  { %v88_v37 = vadd.f32 %v87_v35, %v84_v32 }
  0x2f   :  { %v91_v39 = vadd.f32 %v90_v36, %v88_v37 }
  0x31   :  { %v99_v40 = vrot.slane %v91_v39, %v98_v38 }
  0x33   :  { %v106_v41 = vrot.slane %v99_v40, %v98_v38 }
  0x35   :  { %112 = vst.msk [vmem:[#allocation7] sm:$0x3] %vm110_vm0, %v106_v41 }
  0x36   :  { %186 = shalt.err (!%p183_p9)
}
  0x37   :  { %122 = dma.vmem_to_hbm [thread:$0]  %s120_s27, 32, %s231_s2, [#allocation4]  }
  0x38   :  { %199 = dma.done.wait [#allocation4], 32  }
  0x39   :  { %200 = vsyncadd [#allocation4], 4294967264 }
  0x3a   :  { %126 = vsyncpa [#allocation3], 1 }
  0x3b   :  { %127 = vsyncpa [#allocation4], 1 }
  0x3c   :  { %128 = vsyncpa [#allocation5], 1 }

</bundles_post_ra>
